<compile_context>
chip_gen: v7x
topology: tpu7x:2x2x1
jax: 0.10.0
libtpu: 0.0.40
codegen_flags: <defaults>
</compile_context>

<pallas_src>
import jax
import jax.numpy as jnp
from jax.experimental import pallas as pl
from jax.experimental.pallas import tpu as pltpu

LANE = 128
SMALL_N = 512                      # n_pad <= SMALL_N -> single-block fast path
HI = jax.lax.Precision.HIGHEST


def _round_up(x, m):
    return (x + m - 1) // m * m


def _pad2(a, rows, cols):
    return jnp.pad(a, ((0, rows - a.shape[0]), (0, cols - a.shape[1])))


# ---------------------------------------------------------------------------
# VMEM budgeting (generation-aware: v7x 64 MiB physical, v5e/v6e 128 MiB)
# ---------------------------------------------------------------------------
def _vmem_budget_and_limit():
    cap = 64 * 1024 * 1024
    try:
        cap = int(pltpu.get_tpu_info().vmem_capacity_bytes)
    except Exception:
        pass  # conservative default (v7x-sized) if the query is unavailable
    if cap >= 96 * 1024 * 1024:          # v5e / v6e: 128 MiB physical VMEM
        budget = 40 * 1024 * 1024
    else:                                # v7x: 64 MiB physical VMEM
        budget = 24 * 1024 * 1024
    return budget, budget + 8 * 1024 * 1024


def _pick_config(n_pad, fout, out_itemsize, vmem_budget):
    """Pick (tm, tk, resident_p): biggest A tiles that fit the VMEM budget,
    then keep P fully resident in VMEM if it also fits (no P re-stream)."""

    def footprint(tm, tk, resident):
        p_rows = n_pad if resident else tk
        return (2 * tm * tk * 2                 # A tile, double-buffered, bf16
                + 2 * p_rows * fout * 2         # P (resident or streamed), bf16
                + tm * fout * 4                 # f32 accumulator
                + 2 * tm * fout * out_itemsize)  # output tile, double-buffered

    tm_sel, tk_sel = 128, 128
    for tm in (1024, 512, 256, 128):
        # keep >= 2 row tiles so the "parallel" axis can shard across v7x cores
        if n_pad % tm or n_pad // tm < 2:
            continue
        found = False
        for tk in (2048, 1024, 512, 256, 128):
            if n_pad % tk:
                continue
            if footprint(tm, tk, False) <= vmem_budget:
                tm_sel, tk_sel, found = tm, tk, True
                break
        if found:
            break
    resident_p = footprint(tm_sel, tk_sel, True) <= vmem_budget
    return tm_sel, tk_sel, resident_p


# ---------------------------------------------------------------------------
# Pallas kernels:  out = relu?( A @ P + c )
#   A : [n_pad, n_pad] bf16   streamed (tm, tk) tiles (dominant HBM stream)
#   P : [n_pad, fout]  bf16   resident in VMEM, or streamed (tk, fout) tiles
#   c : [1, fout]      f32    resident (bias + folded BN shift)
# ---------------------------------------------------------------------------
def _make_tiled_kernel(apply_relu, resident_p, tk):
    def kernel(a_ref, p_ref, c_ref, out_ref, acc_ref):
        k = pl.program_id(1)

        @pl.when(k == 0)
        def _():
            acc_ref[...] = jnp.zeros_like(acc_ref)

        if resident_p:
            off = pl.multiple_of(k * tk, tk)
            p_tile = p_ref[pl.ds(off, tk), :]
        else:
            p_tile = p_ref[...]

        acc_ref[...] += jnp.dot(a_ref[...], p_tile,
                                preferred_element_type=jnp.float32)

        @pl.when(k == pl.num_programs(1) - 1)
        def _():
            h = acc_ref[...] + c_ref[...]
            if apply_relu:
                h = jnp.maximum(h, 0.0)
            out_ref[...] = h.astype(out_ref.dtype)

    return kernel


def _make_single_block_kernel(apply_relu):
    def kernel(a_ref, p_ref, c_ref, out_ref):
        h = jnp.dot(a_ref[...], p_ref[...], preferred_element_type=jnp.float32)
        h = h + c_ref[...]
        if apply_relu:
            h = jnp.maximum(h, 0.0)
        out_ref[...] = h.astype(out_ref.dtype)

    return kernel


def _gcn_propagate(a, p, c, *, apply_relu, out_dtype):
    """out[n_pad, fout] = relu?(a @ p + c), a:[n_pad,n_pad], p:[n_pad,fout]."""
    n_pad = a.shape[0]
    fout = p.shape[1]

    if n_pad <= SMALL_N:
        # Small-N fast path: single block, everything in VMEM, no pipeline.
        return pl.pallas_call(
            _make_single_block_kernel(apply_relu),
            out_shape=jax.ShapeDtypeStruct((n_pad, fout), out_dtype),
        )(a, p, c)

    budget, vmem_limit = _vmem_budget_and_limit()
    tm, tk, resident_p = _pick_config(n_pad, fout,
                                      jnp.dtype(out_dtype).itemsize, budget)
    grid = (n_pad // tm, n_pad // tk)

    if resident_p:
        # Constant block index -> DMA'd once, stays resident across the grid.
        p_spec = pl.BlockSpec((n_pad, fout), lambda i, k: (0, 0))
        p_stream_factor = 1
    else:
        p_spec = pl.BlockSpec((tk, fout), lambda i, k: (k, 0))
        p_stream_factor = n_pad // tm

    flops = 2 * n_pad * n_pad * fout
    bytes_accessed = (a.size * a.dtype.itemsize
                      + p.size * p.dtype.itemsize * p_stream_factor
                      + c.size * c.dtype.itemsize
                      + n_pad * fout * jnp.dtype(out_dtype).itemsize)

    return pl.pallas_call(
        _make_tiled_kernel(apply_relu, resident_p, tk),
        out_shape=jax.ShapeDtypeStruct((n_pad, fout), out_dtype),
        grid_spec=pltpu.PrefetchScalarGridSpec(
            num_scalar_prefetch=0,
            grid=grid,
            in_specs=[
                pl.BlockSpec((tm, tk), lambda i, k: (i, k)),   # A tile
                p_spec,                                        # P
                pl.BlockSpec((1, fout), lambda i, k: (0, 0)),  # c (resident)
            ],
            out_specs=pl.BlockSpec((tm, fout), lambda i, k: (i, 0)),
            scratch_shapes=[pltpu.VMEM((tm, fout), jnp.float32)],  # f32 acc
        ),
        compiler_params=pltpu.CompilerParams(
            dimension_semantics=("parallel", "arbitrary"),
            vmem_limit_bytes=vmem_limit,
        ),
        cost_estimate=pl.CostEstimate(flops=int(flops), transcendentals=0,
                                      bytes_accessed=int(bytes_accessed)),
    )(a, p, c)


# ---------------------------------------------------------------------------
# Glue: normalized adjacency, BN folding, padding, two-layer forward
# ---------------------------------------------------------------------------
def normalized_adjacency(edge_index, num_nodes, out_dtype=jnp.float32):
    """A_hat = D^{-1/2}(A + I)D^{-1/2} for an undirected edge_index [2, E].
    For large graphs pass out_dtype=jnp.bfloat16 so the dense N^2 matrix is
    materialized once at kernel precision (no extra f32 HBM round-trip)."""
    # TODO(synk): PyG's gcn_norm scatter-adds duplicate edges and only adds
    # missing self-loops; this assumes a clean edge list (true for the tests).
    a = jnp.zeros((num_nodes, num_nodes), jnp.float32)
    a = a.at[edge_index[0], edge_index[1]].set(1.0)
    a = a + jnp.eye(num_nodes, dtype=jnp.float32)        # self loops
    deg = a.sum(axis=1)
    d_inv_sqrt = 1.0 / jnp.sqrt(deg)                     # deg >= 1, safe
    return (a * d_inv_sqrt[:, None] * d_inv_sqrt[None, :]).astype(out_dtype)


def fold_batchnorm(gamma, beta, running_mean, running_var, eps=1e-5):
    scale = gamma / jnp.sqrt(running_var + eps)
    shift = beta - running_mean * scale
    return scale, shift


def _folded_params(params):
    s1, t1 = fold_batchnorm(params["bn1_gamma"], params["bn1_beta"],
                            params["bn1_mean"], params["bn1_var"])
    s2, t2 = fold_batchnorm(params["bn2_gamma"], params["bn2_beta"],
                            params["bn2_mean"], params["bn2_var"])
    w1f = params["w1"] * s1[None, :]
    c1 = params["b1"] * s1 + t1
    w2f = params["w2"] * s2[None, :]
    c2 = params["b2"] * s2 + t2
    return w1f, c1, w2f, c2


def gcn_encoder_forward(a_hat, x, params, compute_dtype=jnp.bfloat16):
    """Eval-mode forward; dropout(p=0.5, training=False) is the identity."""
    n, in_ch = x.shape
    hid = params["w1"].shape[1]
    out_ch = params["w2"].shape[1]

    w1f, c1, w2f, c2 = _folded_params(params)

    n_pad = _round_up(n, LANE)
    hid_pad = _round_up(hid, LANE)
    out_pad = _round_up(out_ch, LANE)

    # One bf16 copy of A_hat reused by both layers (dominant N^2 HBM stream).
    a_pad = _pad2(a_hat, n_pad, n_pad).astype(compute_dtype)

    # Layer 1: P1 = X @ W1' (tiny XLA prologue), then streamed A @ P1 + c1, relu.
    x_rows = _pad2(x.astype(jnp.float32), n_pad, in_ch)
    p1 = _pad2(jnp.dot(x_rows, w1f, precision=HI),
               n_pad, hid_pad).astype(compute_dtype)
    c1_pad = _pad2(c1[None, :], 1, hid_pad).astype(jnp.float32)
    h = _gcn_propagate(a_pad, p1, c1_pad, apply_relu=True,
                       out_dtype=compute_dtype)

    # Layer 2: P2 = H @ W2' (tiny XLA prologue), then streamed A @ P2 + c2.
    w2f_pad = _pad2(w2f, hid_pad, out_pad)
    p2 = jnp.dot(h.astype(jnp.float32), w2f_pad,
                 precision=HI).astype(compute_dtype)
    c2_pad = _pad2(c2[None, :], 1, out_pad).astype(jnp.float32)
    out = _gcn_propagate(a_pad, p2, c2_pad, apply_relu=False,
                         out_dtype=jnp.float32)
    return out[:n, :out_ch]


# ---------------------------------------------------------------------------
# Pure-JAX reference (same bf16 casts, f32 math) for sanity checking
# ---------------------------------------------------------------------------
def gcn_encoder_ref(a_hat, x, params, compute_dtype=jnp.bfloat16):
    w1f, c1, w2f, c2 = _folded_params(params)
    f32 = jnp.float32
    a = a_hat.astype(compute_dtype).astype(f32)
    p1 = jnp.dot(x.astype(f32), w1f, precision=HI).astype(compute_dtype).astype(f32)
    h = jnp.maximum(jnp.dot(a, p1, precision=HI) + c1[None, :], 0.0)
    h = h.astype(compute_dtype).astype(f32)
    p2 = jnp.dot(h, w2f, precision=HI).astype(compute_dtype).astype(f32)
    return jnp.dot(a, p2, precision=HI) + c2[None, :]


# ---------------------------------------------------------------------------
# Deterministic test cases
# ---------------------------------------------------------------------------
def _make_case(n, in_ch, out_ch, seed=0):
    hid = 2 * out_ch
    key = jax.random.PRNGKey(seed)
    k_x, k_w1, k_b1, k_w2, k_b2, k_bn = jax.random.split(key, 6)
    kb = jax.random.split(k_bn, 8)

    x = jax.random.normal(k_x, (n, in_ch), dtype=jnp.float32)

    # deterministic small undirected graph: ring over n nodes (both directions)
    src = jnp.arange(n, dtype=jnp.int32)
    dst = (src + 1) % n
    edge_index = jnp.stack([jnp.concatenate([src, dst]),
                            jnp.concatenate([dst, src])])       # [2, 2n]
    a_hat = normalized_adjacency(edge_index, n)

    params = {
        "w1": jax.random.normal(k_w1, (in_ch, hid), jnp.float32) * 0.3,
        "b1": jax.random.normal(k_b1, (hid,), jnp.float32) * 0.1,
        "bn1_gamma": 1.0 + 0.1 * jax.random.normal(kb[0], (hid,), jnp.float32),
        "bn1_beta": 0.1 * jax.random.normal(kb[1], (hid,), jnp.float32),
        "bn1_mean": 0.1 * jax.random.normal(kb[2], (hid,), jnp.float32),
        "bn1_var": 1.0 + 0.1 * jax.random.uniform(kb[3], (hid,), jnp.float32),
        "w2": jax.random.normal(k_w2, (hid, out_ch), jnp.float32) * 0.3,
        "b2": jax.random.normal(k_b2, (out_ch,), jnp.float32) * 0.1,
        "bn2_gamma": 1.0 + 0.1 * jax.random.normal(kb[4], (out_ch,), jnp.float32),
        "bn2_beta": 0.1 * jax.random.normal(kb[5], (out_ch,), jnp.float32),
        "bn2_mean": 0.1 * jax.random.normal(kb[6], (out_ch,), jnp.float32),
        "bn2_var": 1.0 + 0.1 * jax.random.uniform(kb[7], (out_ch,), jnp.float32),
    }
    return a_hat, x, params


if __name__ == "__main__":
    # Case 1: tiny graph (N=16, in=8, out=16) -> small-N single-block fast path.
    a_hat, x, params = _make_case(n=16, in_ch=8, out_ch=16, seed=0)
    out = gcn_encoder_forward(a_hat, x, params)
    jax.block_until_ready(out)
    ref = gcn_encoder_ref(a_hat, x, params)
    assert out.shape == (16, 16)
    assert jnp.allclose(out, ref, atol=1e-2, rtol=1e-2), "small-N mismatch"

    # Case 2: N=600 (n_pad=640) exercises the tiled streaming path
    # (grid + pl.when accumulator init/finalize + resident-P slicing).
    a_hat2, x2, params2 = _make_case(n=600, in_ch=8, out_ch=16, seed=0)
    out2 = gcn_encoder_forward(a_hat2, x2, params2)
    jax.block_until_ready(out2)
    ref2 = gcn_encoder_ref(a_hat2, x2, params2)
    assert out2.shape == (600, 16)
    assert jnp.allclose(out2, ref2, atol=1e-2, rtol=1e-2), "tiled-path mismatch"

    print("KERNEL_OK")
</pallas_src>

<mosaic_0001>
module attributes {stable_mosaic.version = 11 : i64} {
  func.func @kernel(%arg0: memref<128x128xbf16, #tpu.memory_space<vmem>>, %arg1: memref<128x128xbf16, #tpu.memory_space<vmem>>, %arg2: memref<1x128xf32, #tpu.memory_space<vmem>>, %arg3: memref<128x128xbf16, #tpu.memory_space<vmem>>) attributes {dimension_semantics = [], scalar_prefetch = 0 : i64, scratch_operands = 0 : i64, tpu.core_type = #tpu.core_type<tc>} {
    %c0 = arith.constant 0 : index
    %c0_0 = arith.constant 0 : index
    %0 = vector.load %arg0[%c0, %c0_0] : memref<128x128xbf16, #tpu.memory_space<vmem>>, vector<128x128xbf16>
    %c0_1 = arith.constant 0 : index
    %c0_2 = arith.constant 0 : index
    %1 = vector.load %arg1[%c0_1, %c0_2] : memref<128x128xbf16, #tpu.memory_space<vmem>>, vector<128x128xbf16>
    %cst = arith.constant dense<0.000000e+00> : vector<128x128xf32>
    %2 = tpu.matmul %0, %1, %cst {dimension_numbers = #tpu.dot_dimension_numbers<[1], [0], [0], [1], [0, 0, 1, 1], [], []>} : vector<128x128xbf16>, vector<128x128xbf16>, vector<128x128xf32> -> vector<128x128xf32>
    %c0_3 = arith.constant 0 : index
    %c0_4 = arith.constant 0 : index
    %3 = vector.load %arg2[%c0_3, %c0_4] : memref<1x128xf32, #tpu.memory_space<vmem>>, vector<1x128xf32>
    %4 = vector.broadcast %3 : vector<1x128xf32> to vector<128x128xf32>
    %5 = arith.addf %2, %4 : vector<128x128xf32>
    %cst_5 = arith.constant 0.000000e+00 : f32
    %6 = vector.broadcast %cst_5 : f32 to vector<128x128xf32>
    %7 = arith.maximumf %5, %6 : vector<128x128xf32>
    %8 = arith.truncf %7 : vector<128x128xf32> to vector<128x128xbf16>
    %c0_6 = arith.constant 0 : index
    %c0_7 = arith.constant 0 : index
    %9 = vector.load %arg3[%c0_6, %c0_7] : memref<128x128xbf16, #tpu.memory_space<vmem>>, vector<128x128xbf16>
    tpu.vector_store %arg3[%c0_6, %c0_7], %8 {strides = array<i32>} : memref<128x128xbf16, #tpu.memory_space<vmem>>, vector<128x128xbf16>,
    return
  }
}

</mosaic_0001>

<bundles_post_ra>
// kernel: tpu_custom_call.1
= control target key start
LH: loop header
LB: loop body
LE: loop exit
PB: predicated region body
PF: predicated region fallthrough
CT: control target
= control target key end

     0   :  { %8 = vsyncpa [#allocation3], 0  ;;  %s716_s0 = inlined_call_operand.hbm [shape: bf16[128,128], index: 0, kind: input, shape index: {}]   ;;  %s717_s1 = inlined_call_operand.hbm [shape: bf16[128,128], index: 1, kind: input, shape index: {}]   ;;  %s718_s2 = inlined_call_operand.vmem [shape: f32[1,128], index: 2, kind: input, shape index: {}]   ;;  %s719_s3 = inlined_call_operand.hbm [shape: bf16[128,128], index: 3, kind: output, shape index: {}]  }
   0x1   :  { %9 = vsyncpa [#allocation6], 0 }
   0x2   :  { %10 = vsyncpa [#allocation4], 0  ;;  %s643_s12 = smov [#allocation2]   ;;  %s571_s16 = scalar_lea.hbm %s716_s0, 1024 }
   0x3   :  { %s16_s13 = sshll.u32 %s643_s12, 4  ;;  %p572_p0 = scmp.ne.s32.totalorder %s716_s0, %s571_s16  ;;  %s17_s13 = int_to_ptr.vmem [resolvable:$true] %s16_s13 }
   0x4   :  { %p575_p1 = scmp.lt.u32.totalorder %s571_s16, %s716_s0 }
   0x6   :  { %p577_p2 = pnand %p575_p1, %p572_p0 }
   0x8   :  { %580 = shalt.err (!%p577_p2)
}
   0x9   :  { %s581_s21 = scalar_lea.vmem %s17_s13, 1024  ;;  %p586_p4 = scmp.lt.s32.totalorder %s17_s13, %s17_s13 }
   0xa   :  { %p582_p3 = scmp.ne.s32.totalorder %s17_s13, %s581_s21  ;;  %p587_p5 = scmp.lt.s32.totalorder %s581_s21, %s581_s21 }
   0xc   :  { %p588_p6 = por %p587_p5, %p586_p4 }
   0xe   :  { %p589_p7 = pnand %p588_p6, %p582_p3 }
  0x10   :  { %592 = shalt.err (!%p589_p7)
}
  0x11   :  { %s644_s22 = smov 64   ;;  %s645_s23 = smov 4  }
  0x12   :  { %22 = dma.hbm_to_vmem [thread:$0]  %s716_s0, 1024, %s17_s13, [#allocation3], %s644_s22, %s644_s22, %s645_s23  }
  0x13   :  { %s646_s26 = smov [#allocation5]   ;;  %s593_s30 = scalar_lea.hbm %s717_s1, 1024 }
  0x14   :  { %s28_s27 = sshll.u32 %s646_s26, 4  ;;  %p594_p8 = scmp.ne.s32.totalorder %s717_s1, %s593_s30  ;;  %s29_s27 = int_to_ptr.vmem [resolvable:$true] %s28_s27 }
  0x15   :  { %p597_p9 = scmp.lt.u32.totalorder %s593_s30, %s717_s1 }
  0x17   :  { %p599_p10 = pnand %p597_p9, %p594_p8 }
  0x19   :  { %602 = shalt.err (!%p599_p10)
}
  0x1a   :  { %s603_s8 = scalar_lea.vmem %s29_s27, 1024  ;;  %p608_p12 = scmp.lt.s32.totalorder %s29_s27, %s29_s27 }
  0x1b   :  { %p604_p11 = scmp.ne.s32.totalorder %s29_s27, %s603_s8  ;;  %p609_p13 = scmp.lt.s32.totalorder %s603_s8, %s603_s8 }
  0x1d   :  { %p610_p0 = por %p609_p13, %p608_p12 }
  0x1f   :  { %p611_p1 = pnand %p610_p0, %p604_p11 }
  0x21   :  { %614 = shalt.err (!%p611_p1)
}
  0x22   :  { %34 = dma.hbm_to_vmem [thread:$0]  %s717_s1, 1024, %s29_s27, [#allocation6], %s644_s22, %s644_s22, %s645_s23  }
  0x23   :  { %637 = dma.done.wait [#allocation3], 1024  }
  0x24   :  { %638 = vsyncadd [#allocation3], 4294966272 }
  0x25   :  { %639 = dma.done.wait [#allocation6], 1024  }
  0x26   :  { %640 = vsyncadd [#allocation6], 4294966272  ;;  %v555_v0 = vld [vmem:[#allocation5] sm:$0xff]   ;;  %v556_v1 = vld [vmem:[#allocation5 + $0x8] sm:$0xff]  }
  0x27   :  { %502 = vmatprep.subr.bf16.mxu0 %v555_v0  ;;  %534 = vmatprep.subr.bf16.mxu1 %v555_v0  ;;  %v557_v2 = vld [vmem:[#allocation5 + $0x10] sm:$0xff]   ;;  %v558_v3 = vld [vmem:[#allocation5 + $0x18] sm:$0xff]   ;;  %v563_v4 = vld [vmem:[#allocation2] sm:$0xff]  }
  0x28   :  { %503 = vmatpush3.bf16.msra.mxu0 %v555_v0  ;;  %542 = vmatpush3.bf16.msra.mxu1 %v555_v0  ;;  %v564_v5 = vld [vmem:[#allocation2 + $0x20] sm:$0xff]   ;;  %v560_v7 = vld [vmem:[#allocation5 + $0x28] sm:$0xff]   ;;  %v561_v8 = vld [vmem:[#allocation5 + $0x30] sm:$0xff]  }
  0x29   :  { %504 = vmatprep.subr.bf16.mxu0 %v556_v1  ;;  %535 = vmatprep.subr.bf16.mxu1 %v556_v1  ;;  %v559_v6 = vld [vmem:[#allocation5 + $0x20] sm:$0xff]   ;;  %v562_v9 = vld [vmem:[#allocation5 + $0x38] sm:$0xff]   ;;  %v565_v10 = vld [vmem:[#allocation2 + $0x8] sm:$0xff]  }
  0x2a   :  { %518 = vmatprep.mubr.bf16.mxu0 %v563_v4  ;;  %526 = vmatprep.mubr.bf16.mxu1 %v564_v5  ;;  %v566_v11 = vld [vmem:[#allocation2 + $0x28] sm:$0xff]   ;;  %v567_v12 = vld [vmem:[#allocation2 + $0x10] sm:$0xff]   ;;  %v569_v14 = vld [vmem:[#allocation2 + $0x18] sm:$0xff]  }
  0x2b   :  { %v568_v13 = vld [vmem:[#allocation2 + $0x30] sm:$0xff]   ;;  %v570_v15 = vld [vmem:[#allocation2 + $0x38] sm:$0xff]   ;;  %v390_v16 = vld [vmem:[%s718_s2] ss:$0 sm:$0xff]  ;;  %s647_s2 = smov [#allocation7]  }
  0x2c   :  { %505 = vmatpush3.bf16.msra.mxu0 %v556_v1  ;;  %543 = vmatpush3.bf16.msra.mxu1 %v556_v1  ;;  %s377_s11 = sshll.u32 %s647_s2, 4  ;;  %s378_s11 = int_to_ptr.vmem [resolvable:$true] %s377_s11 }
  0x2d   :  { %506 = vmatprep.subr.bf16.mxu0 %v557_v2  ;;  %536 = vmatprep.subr.bf16.mxu1 %v557_v2  ;;  %s615_s12 = scalar_lea.vmem %s378_s11, 1024  ;;  %p620_p3 = scmp.lt.s32.totalorder %s378_s11, %s378_s11 }
  0x2e   :  { %p616_p2 = scmp.ne.s32.totalorder %s378_s11, %s615_s12  ;;  %p621_p4 = scmp.lt.s32.totalorder %s615_s12, %s615_s12 }
  0x30   :  { %507 = vmatpush3.bf16.msra.mxu0 %v557_v2  ;;  %544 = vmatpush3.bf16.msra.mxu1 %v557_v2  ;;  %p622_p5 = por %p621_p4, %p620_p3 }
  0x31   :  { %508 = vmatprep.subr.bf16.mxu0 %v558_v3  ;;  %537 = vmatprep.subr.bf16.mxu1 %v558_v3 }
  0x32   :  { %p623_p6 = pnand %p622_p5, %p616_p2 }
  0x34   :  { %509 = vmatpush3.bf16.msra.mxu0 %v558_v3  ;;  %545 = vmatpush3.bf16.msra.mxu1 %v558_v3 }
  0x35   :  { %510 = vmatprep.subr.bf16.mxu0 %v559_v6  ;;  %538 = vmatprep.subr.bf16.mxu1 %v559_v6 }
  0x38   :  { %511 = vmatpush3.bf16.msra.mxu0 %v559_v6  ;;  %546 = vmatpush3.bf16.msra.mxu1 %v559_v6 }
  0x39   :  { %512 = vmatprep.subr.bf16.mxu0 %v560_v7  ;;  %539 = vmatprep.subr.bf16.mxu1 %v560_v7 }
  0x3c   :  { %513 = vmatpush3.bf16.msra.mxu0 %v560_v7  ;;  %547 = vmatpush3.bf16.msra.mxu1 %v560_v7 }
  0x3d   :  { %514 = vmatprep.subr.bf16.mxu0 %v561_v8  ;;  %540 = vmatprep.subr.bf16.mxu1 %v561_v8 }
  0x40   :  { %515 = vmatpush3.bf16.msra.mxu0 %v561_v8  ;;  %548 = vmatpush3.bf16.msra.mxu1 %v561_v8 }
  0x41   :  { %516 = vmatprep.subr.bf16.mxu0 %v562_v9  ;;  %541 = vmatprep.subr.bf16.mxu1 %v562_v9 }
  0x44   :  { %517 = vmatpush3.bf16.msra.mxu0 %v562_v9  ;;  %549 = vmatpush3.bf16.msra.mxu1 %v562_v9 }
  0x47   :  { %519 = vmatmul.mubr.bf16.vlgmr.msra.gmra.mrb[0].mxu0 %v565_v10  ;;  %527 = vmatmul.mubr.bf16.vlgmr.msra.gmra.mrb[0].mxu1 %v566_v11 }
  0x48   :  { %522 = vmatprep.mubr.bf16.mxu0 %v567_v12  ;;  %530 = vmatprep.mubr.bf16.mxu1 %v568_v13 }
  0x4f   :  { %523 = vmatmul.mubr.bf16.gmra.mrb[4].mxu0 %v569_v14  ;;  %531 = vmatmul.mubr.bf16.gmra.mrb[4].mxu1 %v570_v15 }
 0x11a   :  { %v520_v17 = vpop.f32.mrb[0].mxu0  ;;  %v528_v18 = vpop.f32.mrb[0].mxu1 }
 0x11b   :  { %v222_v19 = vadd.f32 %v520_v17, %v390_v16  ;;  %v254_v20 = vadd.f32 %v528_v18, %v390_v16  ;;  %v213_v21 = vpop.f32.mrb[1].mxu0  ;;  %v245_v22 = vpop.f32.mrb[1].mxu1 }
 0x11c   :  { %v214_v23 = vadd.f32 %v390_v16, %v213_v21  ;;  %v246_v24 = vadd.f32 %v390_v16, %v245_v22  ;;  %v521_v25 = vpop.f32.mrb[2].mxu0  ;;  %v529_v26 = vpop.f32.mrb[2].mxu1 }
 0x11d   :  { %v225_v27 = vadd.f32 %v521_v25, %v390_v16  ;;  %v257_v28 = vadd.f32 %v529_v26, %v390_v16  ;;  %v216_v29 = vpop.f32.mrb[3].mxu0  ;;  %v248_v30 = vpop.f32.mrb[3].mxu1  ;;  %v278_v33 = vmax.f32 %v222_v19, 0.0  ;;  %v286_v34 = vmax.f32 %v254_v20, 0.0 }
 0x11e   :  { %v217_v31 = vadd.f32 %v390_v16, %v216_v29  ;;  %v249_v32 = vadd.f32 %v390_v16, %v248_v30  ;;  %v276_v37 = vmax.f32 %v214_v23, 0.0  ;;  %v284_v38 = vmax.f32 %v246_v24, 0.0 }
 0x11f   :  { %v279_v35 = vmax.f32 %v225_v27, 0.0  ;;  %v287_v36 = vmax.f32 %v257_v28, 0.0 }
 0x120   :  { %v277_v39 = vmax.f32 %v217_v31, 0.0  ;;  %v285_v40 = vmax.f32 %v249_v32, 0.0 }
 0x121   :  { %v447_v41 = vpack.c.bf16 %v279_v35, %v278_v33  ;;  %v467_v42 = vpack.c.bf16 %v287_v36, %v286_v34 }
 0x122   :  { %v442_v43 = vpack.c.bf16 %v277_v39, %v276_v37  ;;  %v462_v44 = vpack.c.bf16 %v285_v40, %v284_v38  ;;  %v524_v45 = vpop.f32.mrb[4].mxu0  ;;  %v532_v46 = vpop.f32.mrb[4].mxu1 }
 0x123   :  { %479 = vst [vmem:[#allocation7 + $0x8] sm:$0xff] %v447_v41   ;;  %483 = vst [vmem:[#allocation7 + $0x28] sm:$0xff] %v467_v42   ;;  %v238_v47 = vadd.f32 %v524_v45, %v390_v16  ;;  %v270_v48 = vadd.f32 %v532_v46, %v390_v16  ;;  %v229_v49 = vpop.f32.mrb[5].mxu0  ;;  %v261_v50 = vpop.f32.mrb[5].mxu1 }
 0x124   :  { %443 = vst [vmem:[#allocation7] sm:$0xff] %v442_v43   ;;  %482 = vst [vmem:[#allocation7 + $0x20] sm:$0xff] %v462_v44   ;;  %v230_v51 = vadd.f32 %v390_v16, %v229_v49  ;;  %v262_v52 = vadd.f32 %v390_v16, %v261_v50  ;;  %v525_v53 = vpop.f32.mrb[6].mxu0  ;;  %v533_v54 = vpop.f32.mrb[6].mxu1 }
 0x125   :  { %v241_v55 = vadd.f32 %v525_v53, %v390_v16  ;;  %v273_v56 = vadd.f32 %v533_v54, %v390_v16  ;;  %v232_v57 = vpop.f32.mrb[7].mxu0  ;;  %v264_v58 = vpop.f32.mrb[7].mxu1  ;;  %v282_v61 = vmax.f32 %v238_v47, 0.0  ;;  %v290_v62 = vmax.f32 %v270_v48, 0.0 }
 0x126   :  { %v233_v59 = vadd.f32 %v390_v16, %v232_v57  ;;  %v265_v60 = vadd.f32 %v390_v16, %v264_v58  ;;  %v280_v1 = vmax.f32 %v230_v51, 0.0  ;;  %v288_v2 = vmax.f32 %v262_v52, 0.0 }
 0x127   :  { %v283_v63 = vmax.f32 %v241_v55, 0.0  ;;  %v291_v0 = vmax.f32 %v273_v56, 0.0 }
 0x128   :  { %v281_v3 = vmax.f32 %v233_v59, 0.0  ;;  %v289_v4 = vmax.f32 %v265_v60, 0.0 }
 0x129   :  { %v457_v5 = vpack.c.bf16 %v283_v63, %v282_v61  ;;  %v477_v6 = vpack.c.bf16 %v291_v0, %v290_v62 }
 0x12a   :  { %v452_v7 = vpack.c.bf16 %v281_v3, %v280_v1  ;;  %v472_v8 = vpack.c.bf16 %v289_v4, %v288_v2 }
 0x12b   :  { %481 = vst [vmem:[#allocation7 + $0x18] sm:$0xff] %v457_v5   ;;  %485 = vst [vmem:[#allocation7 + $0x38] sm:$0xff] %v477_v6  }
 0x12c   :  { %480 = vst [vmem:[#allocation7 + $0x10] sm:$0xff] %v452_v7   ;;  %484 = vst [vmem:[#allocation7 + $0x30] sm:$0xff] %v472_v8  }
 0x12d   :  { %626 = shalt.err (!%p623_p6)
}
 0x12e   :  { %s627_s15 = scalar_lea.hbm %s719_s3, 1024 }
 0x12f   :  { %p628_p7 = scmp.ne.s32.totalorder %s719_s3, %s627_s15  ;;  %p631_p8 = scmp.lt.u32.totalorder %s627_s15, %s719_s3 }
 0x131   :  { %p633_p9 = pnand %p631_p8, %p628_p7 }
 0x133   :  { %636 = shalt.err (!%p633_p9)
}
 0x134   :  { %383 = dma.vmem_to_hbm [thread:$0]  %s378_s11, 1024, %s719_s3, [#allocation4], %s644_s22, %s644_s22, %s645_s23  }
 0x135   :  { %641 = dma.done.wait [#allocation4], 1024  }
 0x136   :  { %642 = vsyncadd [#allocation4], 4294966272 }
 0x137   :  { %387 = vsyncpa [#allocation3], 1 }
 0x138   :  { %388 = vsyncpa [#allocation6], 1 }
 0x139   :  { %389 = vsyncpa [#allocation4], 1 }

</bundles_post_ra>
